<compile_context>
chip_gen: v6e
topology: v6e:2x2x1
jax: 0.10.0
libtpu: 0.0.40
codegen_flags: <defaults>
</compile_context>

<pallas_src>
import numpy as np
import jax
import jax.numpy as jnp
from jax.experimental import pallas as pl
from jax.experimental.pallas import tpu as pltpu


def _round_up(x, m):
    return (x + m - 1) // m * m


def _value_proj_kernel(x_ref, w_ref, b_ref, o_ref):
    # attended = softmax(size-1 scores) * V == V == x_packed @ W_packed + b_packed
    o_ref[...] = (
        jnp.dot(x_ref[...], w_ref[...], preferred_element_type=jnp.float32)
        + b_ref[...]
    ).astype(o_ref.dtype)


def make_attention_params(wq, wk, wv, bq, bk, bv):
    """One-time parameter prep (module-init time, outside the hot path).

    Only the value projection affects the output (see GUARD above).  It is
    pre-transposed to (d_in, d_out) and packed into a lane-dense block-diagonal
    weight so the per-call wrapper never transposes, pads or slices activations.
    """
    del wq, wk, bq, bk  # mathematically dead: softmax over a size-1 axis == 1
    d = int(wv.shape[0])
    if 128 % d == 0:
        pack = 128 // d          # rows packed per 128-lane row
        wp = pack * d            # == 128 (native v5e MXU tile)
    else:
        pack = 1                 # fallback: lane-pad d to a 128 multiple
        wp = _round_up(d, 128)

    wv_t = wv.T.astype(jnp.float32)                     # (d_in, d_out)
    w_packed = jnp.zeros((wp, wp), jnp.float32)
    b_packed = jnp.zeros((1, wp), jnp.float32)
    for i in range(pack):
        w_packed = w_packed.at[i * d:(i + 1) * d, i * d:(i + 1) * d].set(wv_t)
        b_packed = b_packed.at[0, i * d:(i + 1) * d].set(bv.astype(jnp.float32))

    return {"w_packed": w_packed, "b_packed": b_packed,
            "d": d, "pack": pack, "wp": wp}


def attention_layer(params, x_i, x_j, *, tile_rows=2048):
    """Forward pass. x_i, x_j: (B, d) float32. Returns (B, d) float32."""
    del x_i  # does not influence the output (see GUARD in header)
    B, d = x_j.shape
    assert d == params["d"]
    pack, wp = params["pack"], params["wp"]

    # ---- pack activations into a lane-dense (R, wp) layout -----------------
    if pack > 1:
        R = pl.cdiv(B, pack)
        if B % pack == 0:
            # Contiguous row-major (B, d) -> (B/pack, 128): free bitcast reshape.
            x_packed = x_j.reshape(R, wp)
        else:
            flat = jnp.pad(x_j.reshape(-1), (0, R * wp - B * d))
            x_packed = flat.reshape(R, wp)
    else:
        # d does not divide 128: lane-pad (rare fallback path).
        R = B
        x_packed = jnp.zeros((B, wp), x_j.dtype).at[:, :d].set(x_j)

    # ---- tiling: multiple-of-8 row tile, pl.cdiv grid (partial last block) --
    tb = min(int(tile_rows), _round_up(R, 8))
    tb = _round_up(tb, 8)
    grid = pl.cdiv(R, tb)

    bytes_accessed = (2 * R * wp + wp * wp + wp) * 4
    cost = pl.CostEstimate(flops=2 * R * wp * wp, transcendentals=0,
                           bytes_accessed=bytes_accessed)

    out_packed = pl.pallas_call(
        _value_proj_kernel,
        out_shape=jax.ShapeDtypeStruct((R, wp), x_j.dtype),
        grid_spec=pltpu.PrefetchScalarGridSpec(
            num_scalar_prefetch=0,
            grid=(grid,),
            in_specs=[
                pl.BlockSpec((tb, wp), lambda i: (i, 0)),   # packed x_j (pipelined)
                pl.BlockSpec((wp, wp), lambda i: (0, 0)),   # packed Wv^T (resident)
                pl.BlockSpec((1, wp), lambda i: (0, 0)),    # packed bias (resident)
            ],
            out_specs=pl.BlockSpec((tb, wp), lambda i: (i, 0)),
        ),
        compiler_params=pltpu.CompilerParams(
            # Row tiles are independent -> megacore-shard on v7x.
            dimension_semantics=("parallel",),
        ),
        cost_estimate=cost,
    )(x_packed, params["w_packed"], params["b_packed"])

    # ---- unpack back to (B, d) ----------------------------------------------
    if pack > 1:
        if B % pack == 0:
            return out_packed.reshape(B, d)
        return out_packed.reshape(-1)[: B * d].reshape(B, d)
    return out_packed[:, :d]


def _reference(x_i, x_j, wq, wk, wv, bq, bk, bv):
    d = x_i.shape[-1]
    q = x_i @ wq.T + bq
    k = x_j @ wk.T + bk
    v = x_j @ wv.T + bv
    scores = jnp.sum(q * k, axis=-1, keepdims=True) / jnp.sqrt(jnp.float32(d))
    w = jax.nn.softmax(scores, axis=-1)
    return w * v


if __name__ == "__main__":
    B, d = 8, 32  # small shapes consistent with the (batch_size, d) signature
    key = jax.random.PRNGKey(0)
    k_xi, k_xj, k_wq, k_wk, k_wv, k_bq, k_bk, k_bv = jax.random.split(key, 8)

    x_i = jax.random.normal(k_xi, (B, d), dtype=jnp.float32)
    x_j = jax.random.normal(k_xj, (B, d), dtype=jnp.float32)

    # Deterministic parameter init mimicking nn.Linear: U(-1/sqrt(d), 1/sqrt(d))
    bound = 1.0 / np.sqrt(d)
    init = lambda k, shape: jax.random.uniform(k, shape, jnp.float32, -bound, bound)
    wq, wk, wv = init(k_wq, (d, d)), init(k_wk, (d, d)), init(k_wv, (d, d))
    bq, bk, bv = init(k_bq, (d,)), init(k_bk, (d,)), init(k_bv, (d,))

    params = make_attention_params(wq, wk, wv, bq, bk, bv)  # one-time prep
    out = attention_layer(params, x_i, x_j)
    out = jax.block_until_ready(out)

    ref = _reference(x_i, x_j, wq, wk, wv, bq, bk, bv)
    np.testing.assert_allclose(np.asarray(out), np.asarray(ref), rtol=1e-5, atol=1e-5)

    print("KERNEL_OK")
</pallas_src>

<mosaic_0001>
module attributes {stable_mosaic.version = 11 : i64} {
  func.func @_value_proj_kernel(%arg0: i32, %arg1: memref<8x128xf32, #tpu.memory_space<vmem>>, %arg2: memref<128x128xf32, #tpu.memory_space<vmem>>, %arg3: memref<1x128xf32, #tpu.memory_space<vmem>>, %arg4: memref<8x128xf32, #tpu.memory_space<vmem>>) attributes {dimension_semantics = [#tpu.dimension_semantics<parallel>], iteration_bounds = array<i64: 1>, scalar_prefetch = 0 : i64, scratch_operands = 0 : i64, tpu.core_type = #tpu.core_type<tc>, window_params = [{transform_indices = @transform_0, window_bounds = array<i64: 8, 128>}, {pipeline_mode = #tpu.pipeline_mode<synchronous>, transform_indices = @transform_1, window_bounds = array<i64: 128, 128>}, {pipeline_mode = #tpu.pipeline_mode<synchronous>, transform_indices = @transform_2, window_bounds = array<i64: 1, 128>}, {transform_indices = @transform_3, window_bounds = array<i64: 8, 128>}]} {
    %c0 = arith.constant 0 : index
    %c0_0 = arith.constant 0 : index
    %0 = vector.load %arg1[%c0, %c0_0] : memref<8x128xf32, #tpu.memory_space<vmem>>, vector<8x128xf32>
    %c0_1 = arith.constant 0 : index
    %c0_2 = arith.constant 0 : index
    %1 = vector.load %arg2[%c0_1, %c0_2] : memref<128x128xf32, #tpu.memory_space<vmem>>, vector<128x128xf32>
    %cst = arith.constant dense<0.000000e+00> : vector<8x128xf32>
    %2 = tpu.matmul %0, %1, %cst {dimension_numbers = #tpu.dot_dimension_numbers<[1], [0], [0], [1], [0, 0, 1, 1], [], []>} : vector<8x128xf32>, vector<128x128xf32>, vector<8x128xf32> -> vector<8x128xf32>
    %c0_3 = arith.constant 0 : index
    %c0_4 = arith.constant 0 : index
    %3 = vector.load %arg3[%c0_3, %c0_4] : memref<1x128xf32, #tpu.memory_space<vmem>>, vector<1x128xf32>
    %4 = vector.broadcast %3 : vector<1x128xf32> to vector<8x128xf32>
    %5 = arith.addf %2, %4 : vector<8x128xf32>
    %c0_5 = arith.constant 0 : index
    %c0_6 = arith.constant 0 : index
    %6 = vector.load %arg4[%c0_5, %c0_6] : memref<8x128xf32, #tpu.memory_space<vmem>>, vector<8x128xf32>
    tpu.vector_store %arg4[%c0_5, %c0_6], %5 {strides = array<i32>} : memref<8x128xf32, #tpu.memory_space<vmem>>, vector<8x128xf32>,
    return
  }
  func.func @transform_0(%arg0: i32) -> (i32, i32) {
    %c0_i32 = arith.constant 0 : i32
    %c0_i32_0 = arith.constant 0 : i32
    return %arg0, %c0_i32 : i32, i32
  }
  func.func @transform_1(%arg0: i32) -> (i32, i32) {
    %c0_i32 = arith.constant 0 : i32
    %c0_i32_0 = arith.constant 0 : i32
    %c0_i32_1 = arith.constant 0 : i32
    return %c0_i32, %c0_i32_0 : i32, i32
  }
  func.func @transform_2(%arg0: i32) -> (i32, i32) {
    %c0_i32 = arith.constant 0 : i32
    %c0_i32_0 = arith.constant 0 : i32
    %c0_i32_1 = arith.constant 0 : i32
    return %c0_i32, %c0_i32_0 : i32, i32
  }
  func.func @transform_3(%arg0: i32) -> (i32, i32) {
    %c0_i32 = arith.constant 0 : i32
    %c0_i32_0 = arith.constant 0 : i32
    return %arg0, %c0_i32 : i32, i32
  }
}

</mosaic_0001>

<bundles_post_ra>
// kernel: tpu_custom_call.1
= control target key start
LH: loop header
LB: loop body
LE: loop exit
PB: predicated region body
PF: predicated region fallthrough
CT: control target
= control target key end

     0   :  { %8 = vsyncpa [#allocation3], 0  ;;  %s331_s0 = inlined_call_operand.hbm [shape: f32[2,128], index: 0, kind: input, shape index: {}]   ;;  %s332_s1 = inlined_call_operand.hbm [shape: f32[128,128], index: 1, kind: input, shape index: {}]   ;;  %s333_s2 = inlined_call_operand.vmem [shape: f32[1,128], index: 2, kind: input, shape index: {}]   ;;  %s334_s3 = inlined_call_operand.hbm [shape: f32[2,128], index: 3, kind: output, shape index: {}]  }
   0x1   :  { %9 = vsyncpa [#allocation6], 0 }
   0x2   :  { %10 = vsyncpa [#allocation4], 0 }
   0x3   :  { %15 = vsyncadd [#allocation3], 96  ;;  %s284_s12 = smov [#allocation2]  }
   0x4   :  { %s16_s13 = sshll.u32 %s284_s12, 4  ;;  %s17_s13 = int_to_ptr.vmem [resolvable:$true] %s16_s13 }
   0x5   :  { %s226_s14 = scalar_lea.vmem %s17_s13, 32  ;;  %s230_s15 = scalar_lea.vmem %s17_s13, 128 }
   0x6   :  { %p227_p0 = scmp.ne.s32.totalorder %s17_s13, %s226_s14  ;;  %p231_p1 = scmp.lt.s32.totalorder %s17_s13, %s17_s13 }
   0x7   :  { %p232_p2 = scmp.lt.s32.totalorder %s230_s15, %s226_s14 }
   0x9   :  { %p233_p3 = por %p232_p2, %p231_p1 }
   0xb   :  { %p234_p4 = pnand %p233_p3, %p227_p0 }
   0xd   :  { %237 = shalt.err (!%p234_p4)
}
   0xe   :  { %s285_s16 = smov 32   ;;  %s286_s17 = smov 2  }
   0xf   :  { %22 = dma.hbm_to_vmem [thread:$0]  %s331_s0, 32, %s17_s13, [#allocation3], %s285_s16, %s285_s16, %s286_s17  }
  0x10   :  { %s287_s20 = smov [#allocation5]  }
  0x11   :  { %s28_s21 = sshll.u32 %s287_s20, 4  ;;  %s29_s21 = int_to_ptr.vmem [resolvable:$true] %s28_s21 }
  0x12   :  { %s246_s22 = scalar_lea.vmem %s29_s21, 2048  ;;  %p251_p6 = scmp.lt.s32.totalorder %s29_s21, %s29_s21 }
  0x13   :  { %p247_p5 = scmp.ne.s32.totalorder %s29_s21, %s246_s22  ;;  %p252_p7 = scmp.lt.s32.totalorder %s246_s22, %s246_s22 }
  0x15   :  { %p253_p8 = por %p252_p7, %p251_p6 }
  0x17   :  { %p254_p9 = pnand %p253_p8, %p247_p5 }
  0x19   :  { %257 = shalt.err (!%p254_p9)
}
  0x1a   :  { %s288_s23 = smov 128   ;;  %s289_s24 = smov 8  }
  0x1b   :  { %34 = dma.hbm_to_vmem [thread:$0]  %s332_s1, 2048, %s29_s21, [#allocation6], %s288_s23, %s288_s23, %s289_s24  }
  0x1c   :  { %278 = dma.done.wait [#allocation3], 128  }
  0x1d   :  { %279 = vsyncadd [#allocation3], 4294967168 }
  0x1e   :  { %280 = dma.done.wait [#allocation6], 2048  }
  0x1f   :  { %281 = vsyncadd [#allocation6], 4294965248  ;;  %v290_v0 = vmov 0.0   ;;  %vm291_vm0 = vmmov 0   ;;  %v59_v1 = vld [vmem:[#allocation5 + $0x78] sm:$0xff]  ;;  %v58_v2 = vld [vmem:[#allocation5 + $0x70] sm:$0xff] }
  0x20   :  { %174 = vmatprep.subr.mxu0 %v290_v0  ;;  %206 = vmatprep.mubr.msk.f32.mxu0 %vm291_vm0, %v290_v0  ;;  %v57_v3 = vld [vmem:[#allocation5 + $0x68] sm:$0xff]  ;;  %v56_v4 = vld [vmem:[#allocation5 + $0x60] sm:$0xff]  ;;  %v55_v5 = vld [vmem:[#allocation5 + $0x58] sm:$0xff] }
  0x21   :  { %175 = vmatpush3.msra.mxu0 %v59_v1  ;;  %v54_v6 = vld [vmem:[#allocation5 + $0x50] sm:$0xff]  ;;  %v53_v7 = vld [vmem:[#allocation5 + $0x48] sm:$0xff]  ;;  %v52_v8 = vld [vmem:[#allocation5 + $0x40] sm:$0xff] }
  0x22   :  { %176 = vmatprep.subr.mxu0 %v290_v0  ;;  %v51_v9 = vld [vmem:[#allocation5 + $0x38] sm:$0xff]  ;;  %v50_v10 = vld [vmem:[#allocation5 + $0x30] sm:$0xff]  ;;  %v49_v11 = vld [vmem:[#allocation5 + $0x28] sm:$0xff] }
  0x23   :  { %177 = vmatpush3.msra.mxu0 %v58_v2  ;;  %v48_v12 = vld [vmem:[#allocation5 + $0x20] sm:$0xff]  ;;  %v47_v13 = vld [vmem:[#allocation5 + $0x18] sm:$0xff]  ;;  %v46_v14 = vld [vmem:[#allocation5 + $0x10] sm:$0xff] }
  0x24   :  { %178 = vmatprep.subr.mxu0 %v290_v0  ;;  %v45_v15 = vld [vmem:[#allocation5 + $0x8] sm:$0xff]  ;;  %v44_v16 = vld [vmem:[#allocation5] sm:$0xff]  ;;  %v43_v17 = vld [vmem:[#allocation2] sm:$0xff] }
  0x25   :  { %179 = vmatpush3.msra.mxu0 %v57_v3  ;;  %v156_v18 = vld [vmem:[%s333_s2] ss:$0 sm:$0xff] }
  0x26   :  { %180 = vmatprep.subr.mxu0 %v290_v0 }
  0x27   :  { %181 = vmatpush3.msra.mxu0 %v56_v4 }
  0x28   :  { %182 = vmatprep.subr.mxu0 %v290_v0 }
  0x29   :  { %183 = vmatpush3.msra.mxu0 %v55_v5 }
  0x2a   :  { %184 = vmatprep.subr.mxu0 %v290_v0 }
  0x2b   :  { %185 = vmatpush3.msra.mxu0 %v54_v6 }
  0x2c   :  { %186 = vmatprep.subr.mxu0 %v290_v0 }
  0x2d   :  { %187 = vmatpush3.msra.mxu0 %v53_v7 }
  0x2e   :  { %188 = vmatprep.subr.mxu0 %v290_v0 }
  0x2f   :  { %189 = vmatpush3.msra.mxu0 %v52_v8 }
  0x30   :  { %190 = vmatprep.subr.mxu0 %v290_v0 }
  0x31   :  { %191 = vmatpush3.msra.mxu0 %v51_v9 }
  0x32   :  { %192 = vmatprep.subr.mxu0 %v290_v0 }
  0x33   :  { %193 = vmatpush3.msra.mxu0 %v50_v10 }
  0x34   :  { %194 = vmatprep.subr.mxu0 %v290_v0 }
  0x35   :  { %195 = vmatpush3.msra.mxu0 %v49_v11 }
  0x36   :  { %196 = vmatprep.subr.mxu0 %v290_v0 }
  0x37   :  { %197 = vmatpush3.msra.mxu0 %v48_v12 }
  0x38   :  { %198 = vmatprep.subr.mxu0 %v290_v0 }
  0x39   :  { %199 = vmatpush3.msra.mxu0 %v47_v13 }
  0x3a   :  { %200 = vmatprep.subr.mxu0 %v290_v0 }
  0x3b   :  { %201 = vmatpush3.msra.mxu0 %v46_v14 }
  0x3c   :  { %202 = vmatprep.subr.mxu0 %v290_v0 }
  0x3d   :  { %203 = vmatpush3.msra.mxu0 %v45_v15 }
  0x3e   :  { %204 = vmatprep.subr.mxu0 %v290_v0 }
  0x3f   :  { %205 = vmatpush3.msra.mxu0 %v44_v16 }
  0x40   :  { %207 = vmatmul.mubr.f32.vlgmr.msra.gmra.mxu0 %v43_v17 }
 0x100   :  { %v133_v19 = vpop.f32.mrf.mxu0 }
 0x101   :  { %v134_v20 = vadd.f32 %v156_v18, %v133_v19 }
 0x102   :  { %v208_v21 = vpop.f32.mrf.mxu0 }
 0x103   :  { %137 = vst [vmem:[#allocation7] sm:$0xff] %v134_v20 }
 0x104   :  { %142 = vsyncadd [#allocation4], 96  ;;  %s292_s27 = smov [#allocation7]  }
 0x105   :  { %s143_s28 = sshll.u32 %s292_s27, 4  ;;  %s144_s28 = int_to_ptr.vmem [resolvable:$true] %s143_s28 }
 0x106   :  { %s258_s29 = scalar_lea.vmem %s144_s28, 32  ;;  %s262_s30 = scalar_lea.vmem %s144_s28, 128 }
 0x107   :  { %p259_p10 = scmp.ne.s32.totalorder %s144_s28, %s258_s29  ;;  %p263_p11 = scmp.lt.s32.totalorder %s144_s28, %s144_s28 }
 0x108   :  { %p264_p12 = scmp.lt.s32.totalorder %s262_s30, %s258_s29 }
 0x10a   :  { %p265_p13 = por %p264_p12, %p263_p11 }
 0x10c   :  { %p266_p0 = pnand %p265_p13, %p259_p10 }
 0x10e   :  { %269 = shalt.err (!%p266_p0)
}
 0x10f   :  { %149 = dma.vmem_to_hbm [thread:$0]  %s144_s28, 32, %s334_s3, [#allocation4], %s285_s16, %s285_s16, %s286_s17  }
 0x110   :  { %282 = dma.done.wait [#allocation4], 128  }
 0x111   :  { %283 = vsyncadd [#allocation4], 4294967168 }
 0x112   :  { %153 = vsyncpa [#allocation3], 1 }
 0x113   :  { %154 = vsyncpa [#allocation6], 1 }
 0x114   :  { %155 = vsyncpa [#allocation4], 1 }

</bundles_post_ra>
